<compile_context>
chip_gen: v5e
topology: v5e:2x2
jax: 0.10.0
libtpu: 0.0.40
codegen_flags: <defaults>
</compile_context>

<pallas_src>
import math
import numpy as np
import jax
import jax.numpy as jnp
from jax.experimental import pallas as pl
from jax.experimental.pallas import tpu as pltpu

d_k = d_v = 7
d_model = 28
n_heads = 4
DH_PAD = 8          # padded head dim (7 -> 8) for sublane/lane-friendly strides
LN_EPS = 1e-5


def mha_kernel(xq_ref, xk_ref, xv_ref, wq_ref, wk_ref, wv_ref, wo_ref,
               out_ref, attn_ref):
    Bt, L, D = xq_ref.shape

    # Fold batch into the M (sublane) dimension: one projection matmul per input.
    xq = xq_ref[...].reshape(Bt * L, D)
    xk = xk_ref[...].reshape(Bt * L, D)
    xv = xv_ref[...].reshape(Bt * L, D)

    # TODO(synk): when input_Q is input_K is input_V (self-attention), fuse the three
    # projections into a single x @ [Wq|Wk|Wv] matmul and drop two activation DMAs.
    Q = jnp.dot(xq, wq_ref[...], preferred_element_type=jnp.float32)   # (Bt*L, H*8)
    K = jnp.dot(xk, wk_ref[...], preferred_element_type=jnp.float32)   # (Bt*L, H*8)
    V = jnp.dot(xv, wv_ref[...], preferred_element_type=jnp.float32)   # (Bt*L, H*8)

    # Sublane split only (lane dim unchanged) -> cheap, layout-friendly reshape.
    Q = Q.reshape(Bt, L, n_heads * DH_PAD)
    K = K.reshape(Bt, L, n_heads * DH_PAD)
    V = V.reshape(Bt, L, n_heads * DH_PAD)

    scale = jnp.float32(1.0 / math.sqrt(d_k))     # true head dim (7), not padded

    attn_heads = []
    ctx_heads = []
    for h in range(n_heads):                      # static, tiny head count -> unrolled
        s = h * DH_PAD                            # 8-aligned lane slices
        Qh = Q[:, :, s:s + DH_PAD]                # (Bt, L, 8)
        Kh = K[:, :, s:s + DH_PAD]
        Vh = V[:, :, s:s + DH_PAD]

        # Batched over the batch dim (supported dot_general pattern).
        scores = jnp.einsum('bqd,bkd->bqk', Qh, Kh,
                            preferred_element_type=jnp.float32) * scale   # (Bt, L, L)
        m = jnp.max(scores, axis=-1, keepdims=True)
        e = jnp.exp(scores - m)
        p = e / jnp.sum(e, axis=-1, keepdims=True)   # exact softmax (tight tolerance)
        attn_heads.append(p)
        ctx_heads.append(jnp.einsum('bqk,bkd->bqd', p, Vh,
                                    preferred_element_type=jnp.float32))  # (Bt, L, 8)

    # Single bulk store of the attention probabilities (no per-head stores).
    attn_ref[...] = jnp.stack(attn_heads, axis=1).astype(attn_ref.dtype)  # (Bt,H,L,L)

    ctx = jnp.concatenate(ctx_heads, axis=-1)           # (Bt, L, H*8), 8-aligned
    ctx = ctx.reshape(Bt * L, n_heads * DH_PAD)
    out = jnp.dot(ctx, wo_ref[...], preferred_element_type=jnp.float32)   # (Bt*L, D)

    # residual + LayerNorm(d_model); fresh nn.LayerNorm in the reference => gamma=1, beta=0
    y = out + xq
    mean = jnp.mean(y, axis=-1, keepdims=True)
    var = jnp.mean(jnp.square(y - mean), axis=-1, keepdims=True)
    y = (y - mean) * jax.lax.rsqrt(var + LN_EPS)
    out_ref[...] = y.reshape(Bt, L, D).astype(out_ref.dtype)


def _tensorcores_per_chip() -> int:
    """Batch-split heuristic: >1 only on chips with >1 TensorCore per device."""
    try:
        kind = jax.devices()[0].device_kind.lower()
    except Exception:
        return 1
    if "lite" in kind or "v5e" in kind or "v6e" in kind:
        return 1                                   # v5e / v6e: single TensorCore
    if "v7" in kind or "7x" in kind:
        return 2                                   # v7x: 2 TensorCores per chip
    if any(t in kind for t in ("v2", "v3", "v4", "v5p")):
        return 2                                   # megacore generations
    return 1


def _pad_heads_out(w, d_head):
    # (d_model, H*d_head) -> (d_model, H*DH_PAD): zero-pad each head's output columns.
    w = w.reshape(d_model, n_heads, d_head)
    w = jnp.pad(w, ((0, 0), (0, 0), (0, DH_PAD - d_head)))
    return w.reshape(d_model, n_heads * DH_PAD)


def _pad_heads_in(w, d_head):
    # (H*d_head, d_model) -> (H*DH_PAD, d_model): zero rows at padded positions.
    w = w.reshape(n_heads, d_head, d_model)
    w = jnp.pad(w, ((0, 0), (0, DH_PAD - d_head), (0, 0)))
    return w.reshape(n_heads * DH_PAD, d_model)


def multi_head_attention(input_Q, input_K, input_V, W_Q, W_K, W_V, W_fc):
    B, L, D = input_Q.shape
    assert D == d_model

    # Pad head dim 7 -> 8 (zero columns / zero rows => numerics unchanged).
    wq = _pad_heads_out(W_Q, d_k)
    wk = _pad_heads_out(W_K, d_k)
    wv = _pad_heads_out(W_V, d_v)
    wo = _pad_heads_in(W_fc, d_v)

    G = _tensorcores_per_chip()
    if B % G != 0:
        G = 1
    Bt = B // G

    act_spec = pl.BlockSpec((Bt, L, d_model), lambda g: (g, 0, 0))
    w_in_spec = pl.BlockSpec((d_model, n_heads * DH_PAD), lambda g: (0, 0))
    w_out_spec = pl.BlockSpec((n_heads * DH_PAD, d_model), lambda g: (0, 0))

    out, attn = pl.pallas_call(
        mha_kernel,
        out_shape=(
            jax.ShapeDtypeStruct((B, L, d_model), jnp.float32),
            jax.ShapeDtypeStruct((B, n_heads, L, L), jnp.float32),
        ),
        grid=(G,),
        in_specs=[act_spec, act_spec, act_spec,
                  w_in_spec, w_in_spec, w_in_spec, w_out_spec],
        out_specs=(
            pl.BlockSpec((Bt, L, d_model), lambda g: (g, 0, 0)),
            pl.BlockSpec((Bt, n_heads, L, L), lambda g: (g, 0, 0, 0)),
        ),
        compiler_params=pltpu.CompilerParams(
            dimension_semantics=("parallel",)),
    )(input_Q, input_K, input_V, wq, wk, wv, wo)
    return out, attn


def reference(input_Q, input_K, input_V, W_Q, W_K, W_V, W_fc):
    B, L, _ = input_Q.shape
    Q = (input_Q @ W_Q).reshape(B, L, n_heads, d_k).transpose(0, 2, 1, 3)
    K = (input_K @ W_K).reshape(B, L, n_heads, d_k).transpose(0, 2, 1, 3)
    V = (input_V @ W_V).reshape(B, L, n_heads, d_v).transpose(0, 2, 1, 3)
    scores = jnp.einsum("bhqd,bhkd->bhqk", Q, K) / np.sqrt(d_k)
    attn = jax.nn.softmax(scores, axis=-1)
    ctx = jnp.einsum("bhqk,bhkd->bhqd", attn, V)
    ctx = ctx.transpose(0, 2, 1, 3).reshape(B, L, n_heads * d_v)
    out = ctx @ W_fc + input_Q
    mean = out.mean(-1, keepdims=True)
    var = ((out - mean) ** 2).mean(-1, keepdims=True)
    return (out - mean) / jnp.sqrt(var + LN_EPS), attn


if __name__ == "__main__":
    key = jax.random.PRNGKey(0)
    kq, kk, kv, kwq, kwk, kwv, kwo = jax.random.split(key, 7)

    B, L = 2, 8
    input_Q = jax.random.normal(kq, (B, L, d_model), dtype=jnp.float32)
    input_K = jax.random.normal(kk, (B, L, d_model), dtype=jnp.float32)
    input_V = jax.random.normal(kv, (B, L, d_model), dtype=jnp.float32)

    # Deterministic parameter init (Linear-like scaling), stored as [in, out].
    bound = 1.0 / math.sqrt(d_model)
    W_Q = jax.random.uniform(kwq, (d_model, n_heads * d_k), jnp.float32, -bound, bound)
    W_K = jax.random.uniform(kwk, (d_model, n_heads * d_k), jnp.float32, -bound, bound)
    W_V = jax.random.uniform(kwv, (d_model, n_heads * d_v), jnp.float32, -bound, bound)
    W_fc = jax.random.uniform(kwo, (n_heads * d_v, d_model), jnp.float32, -bound, bound)

    out, attn = multi_head_attention(input_Q, input_K, input_V, W_Q, W_K, W_V, W_fc)
    out = jax.block_until_ready(out)
    attn = jax.block_until_ready(attn)

    ref_out, ref_attn = reference(input_Q, input_K, input_V, W_Q, W_K, W_V, W_fc)
    assert out.shape == (B, L, d_model) and attn.shape == (B, n_heads, L, L)
    np.testing.assert_allclose(np.asarray(out), np.asarray(ref_out), atol=1e-4, rtol=1e-4)
    np.testing.assert_allclose(np.asarray(attn), np.asarray(ref_attn), atol=1e-5, rtol=1e-5)

    print("KERNEL_OK")
</pallas_src>

<mosaic_0001>
module attributes {stable_mosaic.version = 11 : i64} {
  func.func @mha_kernel(%arg0: i32, %arg1: memref<2x8x28xf32, #tpu.memory_space<vmem>>, %arg2: memref<2x8x28xf32, #tpu.memory_space<vmem>>, %arg3: memref<2x8x28xf32, #tpu.memory_space<vmem>>, %arg4: memref<28x32xf32, #tpu.memory_space<vmem>>, %arg5: memref<28x32xf32, #tpu.memory_space<vmem>>, %arg6: memref<28x32xf32, #tpu.memory_space<vmem>>, %arg7: memref<32x28xf32, #tpu.memory_space<vmem>>, %arg8: memref<2x8x28xf32, #tpu.memory_space<vmem>>, %arg9: memref<2x4x8x8xf32, #tpu.memory_space<vmem>>) attributes {dimension_semantics = [#tpu.dimension_semantics<parallel>], iteration_bounds = array<i64: 1>, scalar_prefetch = 0 : i64, scratch_operands = 0 : i64, tpu.core_type = #tpu.core_type<tc>, window_params = [{transform_indices = @transform_0, window_bounds = array<i64: 2, 8, 28>}, {transform_indices = @transform_1, window_bounds = array<i64: 2, 8, 28>}, {transform_indices = @transform_2, window_bounds = array<i64: 2, 8, 28>}, {pipeline_mode = #tpu.pipeline_mode<synchronous>, transform_indices = @transform_3, window_bounds = array<i64: 28, 32>}, {pipeline_mode = #tpu.pipeline_mode<synchronous>, transform_indices = @transform_4, window_bounds = array<i64: 28, 32>}, {pipeline_mode = #tpu.pipeline_mode<synchronous>, transform_indices = @transform_5, window_bounds = array<i64: 28, 32>}, {pipeline_mode = #tpu.pipeline_mode<synchronous>, transform_indices = @transform_6, window_bounds = array<i64: 32, 28>}, {transform_indices = @transform_7, window_bounds = array<i64: 2, 8, 28>}, {transform_indices = @transform_8, window_bounds = array<i64: 2, 4, 8, 8>}]} {
    %c0 = arith.constant 0 : index
    %c0_0 = arith.constant 0 : index
    %c0_1 = arith.constant 0 : index
    %0 = vector.load %arg1[%c0, %c0_0, %c0_1] : memref<2x8x28xf32, #tpu.memory_space<vmem>>, vector<2x8x28xf32>
    %1 = vector.shape_cast %0 : vector<2x8x28xf32> to vector<16x28xf32>
    %c0_2 = arith.constant 0 : index
    %c0_3 = arith.constant 0 : index
    %c0_4 = arith.constant 0 : index
    %2 = vector.load %arg2[%c0_2, %c0_3, %c0_4] : memref<2x8x28xf32, #tpu.memory_space<vmem>>, vector<2x8x28xf32>
    %3 = vector.shape_cast %2 : vector<2x8x28xf32> to vector<16x28xf32>
    %c0_5 = arith.constant 0 : index
    %c0_6 = arith.constant 0 : index
    %c0_7 = arith.constant 0 : index
    %4 = vector.load %arg3[%c0_5, %c0_6, %c0_7] : memref<2x8x28xf32, #tpu.memory_space<vmem>>, vector<2x8x28xf32>
    %5 = vector.shape_cast %4 : vector<2x8x28xf32> to vector<16x28xf32>
    %c0_8 = arith.constant 0 : index
    %c0_9 = arith.constant 0 : index
    %6 = vector.load %arg4[%c0_8, %c0_9] : memref<28x32xf32, #tpu.memory_space<vmem>>, vector<28x32xf32>
    %cst = arith.constant dense<0.000000e+00> : vector<16x32xf32>
    %7 = tpu.matmul %1, %6, %cst {dimension_numbers = #tpu.dot_dimension_numbers<[1], [0], [0], [1], [0, 0, 1, 1], [], []>} : vector<16x28xf32>, vector<28x32xf32>, vector<16x32xf32> -> vector<16x32xf32>
    %c0_10 = arith.constant 0 : index
    %c0_11 = arith.constant 0 : index
    %8 = vector.load %arg5[%c0_10, %c0_11] : memref<28x32xf32, #tpu.memory_space<vmem>>, vector<28x32xf32>
    %cst_12 = arith.constant dense<0.000000e+00> : vector<16x32xf32>
    %9 = tpu.matmul %3, %8, %cst_12 {dimension_numbers = #tpu.dot_dimension_numbers<[1], [0], [0], [1], [0, 0, 1, 1], [], []>} : vector<16x28xf32>, vector<28x32xf32>, vector<16x32xf32> -> vector<16x32xf32>
    %c0_13 = arith.constant 0 : index
    %c0_14 = arith.constant 0 : index
    %10 = vector.load %arg6[%c0_13, %c0_14] : memref<28x32xf32, #tpu.memory_space<vmem>>, vector<28x32xf32>
    %cst_15 = arith.constant dense<0.000000e+00> : vector<16x32xf32>
    %11 = tpu.matmul %5, %10, %cst_15 {dimension_numbers = #tpu.dot_dimension_numbers<[1], [0], [0], [1], [0, 0, 1, 1], [], []>} : vector<16x28xf32>, vector<28x32xf32>, vector<16x32xf32> -> vector<16x32xf32>
    %12 = vector.shape_cast %7 : vector<16x32xf32> to vector<2x8x32xf32>
    %13 = vector.shape_cast %9 : vector<16x32xf32> to vector<2x8x32xf32>
    %14 = vector.shape_cast %11 : vector<16x32xf32> to vector<2x8x32xf32>
    %15 = vector.extract_strided_slice %12 {offsets = [0, 0, 0], sizes = [2, 8, 8], strides = [1, 1, 1]} : vector<2x8x32xf32> to vector<2x8x8xf32>
    %16 = vector.extract_strided_slice %13 {offsets = [0, 0, 0], sizes = [2, 8, 8], strides = [1, 1, 1]} : vector<2x8x32xf32> to vector<2x8x8xf32>
    %17 = vector.extract_strided_slice %14 {offsets = [0, 0, 0], sizes = [2, 8, 8], strides = [1, 1, 1]} : vector<2x8x32xf32> to vector<2x8x8xf32>
    "tpu.trace_start"() <{level = 10 : i32, message = "bqd,bkd->bqk"}> : () -> ()
    %cst_16 = arith.constant dense<0.000000e+00> : vector<2x8x8xf32>
    %18 = tpu.matmul %15, %16, %cst_16 {dimension_numbers = #tpu.dot_dimension_numbers<[2], [2], [1], [1], [0, 0, 0, 1, 1, 1], [0], [0]>} : vector<2x8x8xf32>, vector<2x8x8xf32>, vector<2x8x8xf32> -> vector<2x8x8xf32>
    "tpu.trace_stop"() : () -> ()
    %cst_17 = arith.constant 0.377964467 : f32
    %19 = vector.broadcast %cst_17 : f32 to vector<2x8x8xf32>
    %20 = arith.mulf %18, %19 : vector<2x8x8xf32>
    %cst_18 = arith.constant dense<0xFF800000> : vector<2x8xf32>
    %21 = vector.multi_reduction <maximumf>, %20, %cst_18 [2] : vector<2x8x8xf32> to vector<2x8xf32>
    %22 = vector.shape_cast %21 : vector<2x8xf32> to vector<2x8x1xf32>
    %23 = vector.broadcast %22 : vector<2x8x1xf32> to vector<2x8x8xf32>
    %24 = arith.subf %20, %23 : vector<2x8x8xf32>
    %25 = math.exp %24 : vector<2x8x8xf32>
    %cst_19 = arith.constant dense<0.000000e+00> : vector<2x8xf32>
    %26 = vector.multi_reduction <add>, %25, %cst_19 [2] : vector<2x8x8xf32> to vector<2x8xf32>
    %27 = vector.shape_cast %26 : vector<2x8xf32> to vector<2x8x1xf32>
    %28 = vector.broadcast %27 : vector<2x8x1xf32> to vector<2x8x8xf32>
    %29 = arith.divf %25, %28 : vector<2x8x8xf32>
    "tpu.trace_start"() <{level = 10 : i32, message = "bqk,bkd->bqd"}> : () -> ()
    %cst_20 = arith.constant dense<0.000000e+00> : vector<2x8x8xf32>
    %30 = tpu.matmul %29, %17, %cst_20 {dimension_numbers = #tpu.dot_dimension_numbers<[2], [1], [1], [2], [0, 0, 0, 1, 1, 2], [0], [0]>} : vector<2x8x8xf32>, vector<2x8x8xf32>, vector<2x8x8xf32> -> vector<2x8x8xf32>
    "tpu.trace_stop"() : () -> ()
    %31 = vector.extract_strided_slice %12 {offsets = [0, 0, 8], sizes = [2, 8, 8], strides = [1, 1, 1]} : vector<2x8x32xf32> to vector<2x8x8xf32>
    %32 = vector.extract_strided_slice %13 {offsets = [0, 0, 8], sizes = [2, 8, 8], strides = [1, 1, 1]} : vector<2x8x32xf32> to vector<2x8x8xf32>
    %33 = vector.extract_strided_slice %14 {offsets = [0, 0, 8], sizes = [2, 8, 8], strides = [1, 1, 1]} : vector<2x8x32xf32> to vector<2x8x8xf32>
    "tpu.trace_start"() <{level = 10 : i32, message = "bqd,bkd->bqk"}> : () -> ()
    %cst_21 = arith.constant dense<0.000000e+00> : vector<2x8x8xf32>
    %34 = tpu.matmul %31, %32, %cst_21 {dimension_numbers = #tpu.dot_dimension_numbers<[2], [2], [1], [1], [0, 0, 0, 1, 1, 1], [0], [0]>} : vector<2x8x8xf32>, vector<2x8x8xf32>, vector<2x8x8xf32> -> vector<2x8x8xf32>
    "tpu.trace_stop"() : () -> ()
    %cst_22 = arith.constant 0.377964467 : f32
    %35 = vector.broadcast %cst_22 : f32 to vector<2x8x8xf32>
    %36 = arith.mulf %34, %35 : vector<2x8x8xf32>
    %cst_23 = arith.constant dense<0xFF800000> : vector<2x8xf32>
    %37 = vector.multi_reduction <maximumf>, %36, %cst_23 [2] : vector<2x8x8xf32> to vector<2x8xf32>
    %38 = vector.shape_cast %37 : vector<2x8xf32> to vector<2x8x1xf32>
    %39 = vector.broadcast %38 : vector<2x8x1xf32> to vector<2x8x8xf32>
    %40 = arith.subf %36, %39 : vector<2x8x8xf32>
    %41 = math.exp %40 : vector<2x8x8xf32>
    %cst_24 = arith.constant dense<0.000000e+00> : vector<2x8xf32>
    %42 = vector.multi_reduction <add>, %41, %cst_24 [2] : vector<2x8x8xf32> to vector<2x8xf32>
    %43 = vector.shape_cast %42 : vector<2x8xf32> to vector<2x8x1xf32>
    %44 = vector.broadcast %43 : vector<2x8x1xf32> to vector<2x8x8xf32>
    %45 = arith.divf %41, %44 : vector<2x8x8xf32>
    "tpu.trace_start"() <{level = 10 : i32, message = "bqk,bkd->bqd"}> : () -> ()
    %cst_25 = arith.constant dense<0.000000e+00> : vector<2x8x8xf32>
    %46 = tpu.matmul %45, %33, %cst_25 {dimension_numbers = #tpu.dot_dimension_numbers<[2], [1], [1], [2], [0, 0, 0, 1, 1, 2], [0], [0]>} : vector<2x8x8xf32>, vector<2x8x8xf32>, vector<2x8x8xf32> -> vector<2x8x8xf32>
    "tpu.trace_stop"() : () -> ()
    %47 = vector.extract_strided_slice %12 {offsets = [0, 0, 16], sizes = [2, 8, 8], strides = [1, 1, 1]} : vector<2x8x32xf32> to vector<2x8x8xf32>
    %48 = vector.extract_strided_slice %13 {offsets = [0, 0, 16], sizes = [2, 8, 8], strides = [1, 1, 1]} : vector<2x8x32xf32> to vector<2x8x8xf32>
    %49 = vector.extract_strided_slice %14 {offsets = [0, 0, 16], sizes = [2, 8, 8], strides = [1, 1, 1]} : vector<2x8x32xf32> to vector<2x8x8xf32>
    "tpu.trace_start"() <{level = 10 : i32, message = "bqd,bkd->bqk"}> : () -> ()
    %cst_26 = arith.constant dense<0.000000e+00> : vector<2x8x8xf32>
    %50 = tpu.matmul %47, %48, %cst_26 {dimension_numbers = #tpu.dot_dimension_numbers<[2], [2], [1], [1], [0, 0, 0, 1, 1, 1], [0], [0]>} : vector<2x8x8xf32>, vector<2x8x8xf32>, vector<2x8x8xf32> -> vector<2x8x8xf32>
    "tpu.trace_stop"() : () -> ()
    %cst_27 = arith.constant 0.377964467 : f32
    %51 = vector.broadcast %cst_27 : f32 to vector<2x8x8xf32>
    %52 = arith.mulf %50, %51 : vector<2x8x8xf32>
    %cst_28 = arith.constant dense<0xFF800000> : vector<2x8xf32>
    %53 = vector.multi_reduction <maximumf>, %52, %cst_28 [2] : vector<2x8x8xf32> to vector<2x8xf32>
    %54 = vector.shape_cast %53 : vector<2x8xf32> to vector<2x8x1xf32>
    %55 = vector.broadcast %54 : vector<2x8x1xf32> to vector<2x8x8xf32>
    %56 = arith.subf %52, %55 : vector<2x8x8xf32>
    %57 = math.exp %56 : vector<2x8x8xf32>
    %cst_29 = arith.constant dense<0.000000e+00> : vector<2x8xf32>
    %58 = vector.multi_reduction <add>, %57, %cst_29 [2] : vector<2x8x8xf32> to vector<2x8xf32>
    %59 = vector.shape_cast %58 : vector<2x8xf32> to vector<2x8x1xf32>
    %60 = vector.broadcast %59 : vector<2x8x1xf32> to vector<2x8x8xf32>
    %61 = arith.divf %57, %60 : vector<2x8x8xf32>
    "tpu.trace_start"() <{level = 10 : i32, message = "bqk,bkd->bqd"}> : () -> ()
    %cst_30 = arith.constant dense<0.000000e+00> : vector<2x8x8xf32>
    %62 = tpu.matmul %61, %49, %cst_30 {dimension_numbers = #tpu.dot_dimension_numbers<[2], [1], [1], [2], [0, 0, 0, 1, 1, 2], [0], [0]>} : vector<2x8x8xf32>, vector<2x8x8xf32>, vector<2x8x8xf32> -> vector<2x8x8xf32>
    "tpu.trace_stop"() : () -> ()
    %63 = vector.extract_strided_slice %12 {offsets = [0, 0, 24], sizes = [2, 8, 8], strides = [1, 1, 1]} : vector<2x8x32xf32> to vector<2x8x8xf32>
    %64 = vector.extract_strided_slice %13 {offsets = [0, 0, 24], sizes = [2, 8, 8], strides = [1, 1, 1]} : vector<2x8x32xf32> to vector<2x8x8xf32>
    %65 = vector.extract_strided_slice %14 {offsets = [0, 0, 24], sizes = [2, 8, 8], strides = [1, 1, 1]} : vector<2x8x32xf32> to vector<2x8x8xf32>
    "tpu.trace_start"() <{level = 10 : i32, message = "bqd,bkd->bqk"}> : () -> ()
    %cst_31 = arith.constant dense<0.000000e+00> : vector<2x8x8xf32>
    %66 = tpu.matmul %63, %64, %cst_31 {dimension_numbers = #tpu.dot_dimension_numbers<[2], [2], [1], [1], [0, 0, 0, 1, 1, 1], [0], [0]>} : vector<2x8x8xf32>, vector<2x8x8xf32>, vector<2x8x8xf32> -> vector<2x8x8xf32>
    "tpu.trace_stop"() : () -> ()
    %cst_32 = arith.constant 0.377964467 : f32
    %67 = vector.broadcast %cst_32 : f32 to vector<2x8x8xf32>
    %68 = arith.mulf %66, %67 : vector<2x8x8xf32>
    %cst_33 = arith.constant dense<0xFF800000> : vector<2x8xf32>
    %69 = vector.multi_reduction <maximumf>, %68, %cst_33 [2] : vector<2x8x8xf32> to vector<2x8xf32>
    %70 = vector.shape_cast %69 : vector<2x8xf32> to vector<2x8x1xf32>
    %71 = vector.broadcast %70 : vector<2x8x1xf32> to vector<2x8x8xf32>
    %72 = arith.subf %68, %71 : vector<2x8x8xf32>
    %73 = math.exp %72 : vector<2x8x8xf32>
    %cst_34 = arith.constant dense<0.000000e+00> : vector<2x8xf32>
    %74 = vector.multi_reduction <add>, %73, %cst_34 [2] : vector<2x8x8xf32> to vector<2x8xf32>
    %75 = vector.shape_cast %74 : vector<2x8xf32> to vector<2x8x1xf32>
    %76 = vector.broadcast %75 : vector<2x8x1xf32> to vector<2x8x8xf32>
    %77 = arith.divf %73, %76 : vector<2x8x8xf32>
    "tpu.trace_start"() <{level = 10 : i32, message = "bqk,bkd->bqd"}> : () -> ()
    %cst_35 = arith.constant dense<0.000000e+00> : vector<2x8x8xf32>
    %78 = tpu.matmul %77, %65, %cst_35 {dimension_numbers = #tpu.dot_dimension_numbers<[2], [1], [1], [2], [0, 0, 0, 1, 1, 2], [0], [0]>} : vector<2x8x8xf32>, vector<2x8x8xf32>, vector<2x8x8xf32> -> vector<2x8x8xf32>
    "tpu.trace_stop"() : () -> ()
    %79 = vector.shape_cast %29 : vector<2x8x8xf32> to vector<2x1x8x8xf32>
    %80 = vector.shape_cast %45 : vector<2x8x8xf32> to vector<2x1x8x8xf32>
    %81 = vector.shape_cast %61 : vector<2x8x8xf32> to vector<2x1x8x8xf32>
    %82 = vector.shape_cast %77 : vector<2x8x8xf32> to vector<2x1x8x8xf32>
    %83 = tpu.concatenate %79, %80, %81, %82 in 1 : vector<2x1x8x8xf32>, vector<2x1x8x8xf32>, vector<2x1x8x8xf32>, vector<2x1x8x8xf32> -> vector<2x4x8x8xf32>
    %c0_36 = arith.constant 0 : index
    %c0_37 = arith.constant 0 : index
    %c0_38 = arith.constant 0 : index
    %c0_39 = arith.constant 0 : index
    %84 = vector.load %arg9[%c0_36, %c0_37, %c0_38, %c0_39] : memref<2x4x8x8xf32, #tpu.memory_space<vmem>>, vector<2x4x8x8xf32>
    tpu.vector_store %arg9[%c0_36, %c0_37, %c0_38, %c0_39], %83 {strides = array<i32>} : memref<2x4x8x8xf32, #tpu.memory_space<vmem>>, vector<2x4x8x8xf32>,
    %85 = tpu.concatenate %30, %46, %62, %78 in 2 : vector<2x8x8xf32>, vector<2x8x8xf32>, vector<2x8x8xf32>, vector<2x8x8xf32> -> vector<2x8x32xf32>
    %86 = vector.shape_cast %85 : vector<2x8x32xf32> to vector<16x32xf32>
    %c0_40 = arith.constant 0 : index
    %c0_41 = arith.constant 0 : index
    %87 = vector.load %arg7[%c0_40, %c0_41] : memref<32x28xf32, #tpu.memory_space<vmem>>, vector<32x28xf32>
    %cst_42 = arith.constant dense<0.000000e+00> : vector<16x28xf32>
    %88 = tpu.matmul %86, %87, %cst_42 {dimension_numbers = #tpu.dot_dimension_numbers<[1], [0], [0], [1], [0, 0, 1, 1], [], []>} : vector<16x32xf32>, vector<32x28xf32>, vector<16x28xf32> -> vector<16x28xf32>
    %89 = arith.addf %88, %1 : vector<16x28xf32>
    %cst_43 = arith.constant dense<0.000000e+00> : vector<16xf32>
    %90 = vector.multi_reduction <add>, %89, %cst_43 [1] : vector<16x28xf32> to vector<16xf32>
    %91 = vector.shape_cast %90 : vector<16xf32> to vector<16x1xf32>
    %cst_44 = arith.constant 2.800000e+01 : f32
    %92 = vector.broadcast %cst_44 : f32 to vector<16x1xf32>
    %93 = arith.divf %91, %92 : vector<16x1xf32>
    %94 = vector.broadcast %93 : vector<16x1xf32> to vector<16x28xf32>
    %95 = arith.subf %89, %94 : vector<16x28xf32>
    %96 = arith.mulf %95, %95 : vector<16x28xf32>
    %cst_45 = arith.constant dense<0.000000e+00> : vector<16xf32>
    %97 = vector.multi_reduction <add>, %96, %cst_45 [1] : vector<16x28xf32> to vector<16xf32>
    %98 = vector.shape_cast %97 : vector<16xf32> to vector<16x1xf32>
    %cst_46 = arith.constant 2.800000e+01 : f32
    %99 = vector.broadcast %cst_46 : f32 to vector<16x1xf32>
    %100 = arith.divf %98, %99 : vector<16x1xf32>
    %101 = vector.broadcast %93 : vector<16x1xf32> to vector<16x28xf32>
    %102 = arith.subf %89, %101 : vector<16x28xf32>
    %cst_47 = arith.constant 9.99999974E-6 : f32
    %103 = vector.broadcast %cst_47 : f32 to vector<16x1xf32>
    %104 = arith.addf %100, %103 : vector<16x1xf32>
    %105 = math.rsqrt %104 : vector<16x1xf32>
    %106 = vector.broadcast %105 : vector<16x1xf32> to vector<16x28xf32>
    %107 = arith.mulf %102, %106 : vector<16x28xf32>
    %108 = vector.shape_cast %107 : vector<16x28xf32> to vector<2x8x28xf32>
    %c0_48 = arith.constant 0 : index
    %c0_49 = arith.constant 0 : index
    %c0_50 = arith.constant 0 : index
    %109 = vector.load %arg8[%c0_48, %c0_49, %c0_50] : memref<2x8x28xf32, #tpu.memory_space<vmem>>, vector<2x8x28xf32>
    tpu.vector_store %arg8[%c0_48, %c0_49, %c0_50], %108 {strides = array<i32>} : memref<2x8x28xf32, #tpu.memory_space<vmem>>, vector<2x8x28xf32>,
    return
  }
  func.func @transform_0(%arg0: i32) -> (i32, i32, i32) {
    %c0_i32 = arith.constant 0 : i32
    %c0_i32_0 = arith.constant 0 : i32
    %c0_i32_1 = arith.constant 0 : i32
    return %arg0, %c0_i32, %c0_i32_0 : i32, i32, i32
  }
  func.func @transform_1(%arg0: i32) -> (i32, i32, i32) {
    %c0_i32 = arith.constant 0 : i32
    %c0_i32_0 = arith.constant 0 : i32
    %c0_i32_1 = arith.constant 0 : i32
    return %arg0, %c0_i32, %c0_i32_0 : i32, i32, i32
  }
  func.func @transform_2(%arg0: i32) -> (i32, i32, i32) {
    %c0_i32 = arith.constant 0 : i32
    %c0_i32_0 = arith.constant 0 : i32
    %c0_i32_1 = arith.constant 0 : i32
    return %arg0, %c0_i32, %c0_i32_0 : i32, i32, i32
  }
  func.func @transform_3(%arg0: i32) -> (i32, i32) {
    %c0_i32 = arith.constant 0 : i32
    %c0_i32_0 = arith.constant 0 : i32
    %c0_i32_1 = arith.constant 0 : i32
    return %c0_i32, %c0_i32_0 : i32, i32
  }
  func.func @transform_4(%arg0: i32) -> (i32, i32) {
    %c0_i32 = arith.constant 0 : i32
    %c0_i32_0 = arith.constant 0 : i32
    %c0_i32_1 = arith.constant 0 : i32
    return %c0_i32, %c0_i32_0 : i32, i32
  }
  func.func @transform_5(%arg0: i32) -> (i32, i32) {
    %c0_i32 = arith.constant 0 : i32
    %c0_i32_0 = arith.constant 0 : i32
    %c0_i32_1 = arith.constant 0 : i32
    return %c0_i32, %c0_i32_0 : i32, i32
  }
  func.func @transform_6(%arg0: i32) -> (i32, i32) {
    %c0_i32 = arith.constant 0 : i32
    %c0_i32_0 = arith.constant 0 : i32
    %c0_i32_1 = arith.constant 0 : i32
    return %c0_i32, %c0_i32_0 : i32, i32
  }
  func.func @transform_7(%arg0: i32) -> (i32, i32, i32) {
    %c0_i32 = arith.constant 0 : i32
    %c0_i32_0 = arith.constant 0 : i32
    %c0_i32_1 = arith.constant 0 : i32
    return %arg0, %c0_i32, %c0_i32_0 : i32, i32, i32
  }
  func.func @transform_8(%arg0: i32) -> (i32, i32, i32, i32) {
    %c0_i32 = arith.constant 0 : i32
    %c0_i32_0 = arith.constant 0 : i32
    %c0_i32_1 = arith.constant 0 : i32
    %c0_i32_2 = arith.constant 0 : i32
    return %arg0, %c0_i32, %c0_i32_0, %c0_i32_1 : i32, i32, i32, i32
  }
}

</mosaic_0001>

<bundles_post_ra>
// kernel: tpu_custom_call.1
= control target key start
LH: loop header
LB: loop body
LE: loop exit
PB: predicated region body
PF: predicated region fallthrough
CT: control target
= control target key end

     0   :  { %14 = vsyncpa [#allocation3], 0  ;;  %s1630_s0 = inlined_call_operand.hbm [shape: f32[2,8,28], index: 0, kind: input, shape index: {}]   ;;  %s1631_s1 = inlined_call_operand.hbm [shape: f32[2,8,28], index: 1, kind: input, shape index: {}]   ;;  %s1632_s2 = inlined_call_operand.hbm [shape: f32[2,8,28], index: 2, kind: input, shape index: {}]   ;;  %s1633_s3 = inlined_call_operand.hbm [shape: f32[28,32], index: 3, kind: input, shape index: {}]   ;;  %s1634_s4 = inlined_call_operand.hbm [shape: f32[28,32], index: 4, kind: input, shape index: {}]   ;;  %s1635_s5 = inlined_call_operand.hbm [shape: f32[28,32], index: 5, kind: input, shape index: {}]   ;;  %s1636_s6 = inlined_call_operand.hbm [shape: f32[32,28], index: 6, kind: input, shape index: {}]   ;;  %s1637_s7 = inlined_call_operand.hbm [shape: f32[2,8,28], index: 7, kind: output, shape index: {0}]   ;;  %s1638_s8 = inlined_call_operand.hbm [shape: f32[2,4,8,8], index: 8, kind: output, shape index: {1}]  }
   0x1   :  { %15 = vsyncpa [#allocation6], 0 }
   0x2   :  { %16 = vsyncpa [#allocation9], 0 }
   0x3   :  { %17 = vsyncpa [#allocation12], 0 }
   0x4   :  { %18 = vsyncpa [#allocation4], 0 }
   0x5   :  { %19 = vsyncpa [#allocation16], 0  ;;  %s37_s29 = sshll.u32 %s1631_s1, 4  ;;  %s1369_s30 = smov [#allocation5]   ;;  %s38_s29 = int_to_ptr.hbm [resolvable:$true] %s37_s29 }
   0x6   :  { %s39_s9 = sshll.u32 %s1369_s30, 4  ;;  %s63_s12 = sshll.u32 %s1633_s3, 4  ;;  %s40_s9 = int_to_ptr.vmem [resolvable:$true] %s39_s9  ;;  %s64_s12 = int_to_ptr.hbm [resolvable:$true] %s63_s12 }
   0x7   :  { %s1370_s13 = smov 128   ;;  %s1371_s14 = smov 8  }
   0x8   :  { %45 = dma.hbm_to_vmem [thread:$0]  %s38_s29, 256, %s40_s9, [#allocation6], %s1370_s13, %s1370_s13, %s1371_s14  }
   0x9   :  { %s1372_s15 = smov [#allocation8]   ;;  %s89_s1 = sshll.u32 %s1635_s5, 4  ;;  %s90_s1 = int_to_ptr.hbm [resolvable:$true] %s89_s1 }
   0xa   :  { %s65_s16 = sshll.u32 %s1372_s15, 4  ;;  %s24_s20 = sshll.u32 %s1630_s0, 4  ;;  %s66_s16 = int_to_ptr.vmem [resolvable:$true] %s65_s16  ;;  %s25_s20 = int_to_ptr.hbm [resolvable:$true] %s24_s20 }
   0xb   :  { %71 = dma.hbm_to_vmem [thread:$0]  %s64_s12, 512, %s66_s16, [#allocation9], %s1370_s13, %s1370_s13, %s1371_s14  }
   0xc   :  { %s1373_s21 = smov [#allocation11]   ;;  %s1374_s23 = smov [#allocation2]  }
   0xd   :  { %s91_s22 = sshll.u32 %s1373_s21, 4  ;;  %s26_s5 = sshll.u32 %s1374_s23, 4  ;;  %s92_s22 = int_to_ptr.vmem [resolvable:$true] %s91_s22  ;;  %s27_s5 = int_to_ptr.vmem [resolvable:$true] %s26_s5 }
   0xe   :  { %97 = dma.hbm_to_vmem [thread:$0]  %s90_s1, 512, %s92_s22, [#allocation12], %s1370_s13, %s1370_s13, %s1371_s14  }
   0xf   :  { %s50_s26 = sshll.u32 %s1632_s2, 4  ;;  %s76_s28 = sshll.u32 %s1634_s4, 4  ;;  %s51_s26 = int_to_ptr.hbm [resolvable:$true] %s50_s26  ;;  %s77_s28 = int_to_ptr.hbm [resolvable:$true] %s76_s28 }
  0x10   :  { %32 = dma.hbm_to_vmem [thread:$0]  %s25_s20, 256, %s27_s5, [#allocation3], %s1370_s13, %s1370_s13, %s1371_s14  }
  0x11   :  { %s1375_s29 = smov [#allocation7]   ;;  %s1376_s9 = smov [#allocation10]  }
  0x12   :  { %s52_s30 = sshll.u32 %s1375_s29, 4  ;;  %s78_s2 = sshll.u32 %s1376_s9, 4  ;;  %s53_s30 = int_to_ptr.vmem [resolvable:$true] %s52_s30  ;;  %s79_s2 = int_to_ptr.vmem [resolvable:$true] %s78_s2 }
  0x13   :  { %58 = dma.hbm_to_vmem [thread:$0]  %s51_s26, 256, %s53_s30, [#allocation6], %s1370_s13, %s1370_s13, %s1371_s14  }
  0x14   :  { %s102_s12 = sshll.u32 %s1636_s6, 4  ;;  %s1377_s4 = smov [#allocation13]   ;;  %s103_s12 = int_to_ptr.hbm [resolvable:$true] %s102_s12 }
  0x15   :  { %84 = dma.hbm_to_vmem [thread:$0]  %s77_s28, 512, %s79_s2, [#allocation9], %s1370_s13, %s1370_s13, %s1371_s14  }
  0x16   :  { %s104_s15 = sshll.u32 %s1377_s4, 4  ;;  %s105_s15 = int_to_ptr.vmem [resolvable:$true] %s104_s15 }
  0x17   :  { %110 = dma.hbm_to_vmem [thread:$0]  %s103_s12, 512, %s105_s15, [#allocation12], %s1370_s13, %s1370_s13, %s1371_s14  }
  0x18   :  { %1357 = dma.done.wait [#allocation3], 256  }
  0x19   :  { %1358 = vsyncadd [#allocation3], 4294967040 }
  0x1a   :  { %1359 = dma.done.wait [#allocation6], 512  }
  0x1b   :  { %1360 = vsyncadd [#allocation6], 4294966784 }
  0x1c   :  { %1361 = dma.done.wait [#allocation9], 1024  }
  0x1d   :  { %1362 = vsyncadd [#allocation9], 4294966272 }
  0x1e   :  { %1363 = dma.done.wait [#allocation12], 1024  }
  0x1f   :  { %1364 = vsyncadd [#allocation12], 4294966272  ;;  %vm156_vm0 = vcmask 1043456   ;;  %v148_v0 = vld [vmem:[#allocation8 + $0x18] sm:$0xf]  ;;  %v147_v2 = vld [vmem:[#allocation8 + $0x10] sm:$0xff] }
  0x20   :  { %v186_v1 = vld [vmem:[#allocation10 + $0x18] sm:$0xf]  ;;  %1047 = vmatpush.msk.msra.mxu0 %vm156_vm0, %v148_v0  ;;  %v185_v3 = vld [vmem:[#allocation10 + $0x10] sm:$0xff]  ;;  %v146_v4 = vld [vmem:[#allocation8 + $0x8] sm:$0xff]  ;;  %vm149_vm1 = vcmask 228352   ;;  %vm255_vm2 = vcmask 64512  }
  0x21   :  { %1050 = vmatpush.msk.msra.mxu1 %vm156_vm0, %v186_v1  ;;  %1082 = vmatpush.msk.msra.mxu2 %vm156_vm0, %v186_v1  ;;  %v184_v5 = vld [vmem:[#allocation10 + $0x8] sm:$0xff]  ;;  %v145_v6 = vld [vmem:[#allocation8] sm:$0xff]  ;;  %v1476_v8 = vld [vmem:[#allocation2] sm:$0xff]  ;;  %s1378_s6 = smov 112   ;;  %s1379_s16 = smov 120  }
  0x22   :  { %173 = vmatpush.msra.mxu0 %v147_v2  ;;  %v183_v7 = vld [vmem:[#allocation10] sm:$0xff]  ;;  %v142_v10 = vld [vmem:[#allocation5 + $0x8] sm:$0xff]  ;;  %v1482_v11 = vld [vmem:[#allocation2 + $0x8] sm:$0xff]  ;;  %s1380_s17 = smov 104   ;;  %s1381_s18 = smov 16  }
  0x23   :  { %209 = vmatpush.msra.mxu1 %v185_v3  ;;  %1083 = vmatpush.msra.mxu2 %v185_v3  ;;  %v141_v9 = vld [vmem:[#allocation5] sm:$0xff]  ;;  %v222_v16 = vld [vmem:[#allocation11 + $0x18] sm:$0xf]  ;;  %v221_v17 = vld [vmem:[#allocation11 + $0x10] sm:$0xff]  ;;  %s1382_s1 = smov 24   ;;  %s1384_s3 = smov [#allocation15]  }
  0x24   :  { %174 = vmatpush.msra.mxu0 %v146_v4  ;;  %v220_v18 = vld [vmem:[#allocation11 + $0x8] sm:$0xff]  ;;  %v219_v19 = vld [vmem:[#allocation11] sm:$0xff]  ;;  %v143_v20 = vld [vmem:[#allocation7] sm:$0xff]  ;;  %s1024_s19 = sshll.u32 %s1384_s3, 4  ;;  %s1026_s22 = sshll.u32 %s1638_s8, 4  ;;  %s1025_s19 = int_to_ptr.vmem [resolvable:$true] %s1024_s19  ;;  %s1027_s22 = int_to_ptr.hbm [resolvable:$true] %s1026_s22 }
  0x25   :  { %210 = vmatpush.msra.mxu1 %v184_v5  ;;  %1084 = vmatpush.msra.mxu2 %v184_v5  ;;  %v144_v21 = vld [vmem:[#allocation7 + $0x8] sm:$0xff]  ;;  %s1385_s8 = smov [#allocation14]   ;;  %s1013_s25 = sshll.u32 %s1637_s7, 4  ;;  %s1014_s25 = int_to_ptr.hbm [resolvable:$true] %s1013_s25 }
  0x26   :  { %175 = vmatpush.msra.mxu0 %v145_v6  ;;  %s1011_s23 = sshll.u32 %s1385_s8, 4  ;;  %s1012_s23 = int_to_ptr.vmem [resolvable:$true] %s1011_s23 }
  0x27   :  { %211 = vmatpush.msra.mxu1 %v183_v7  ;;  %1048 = vmatmul.msk.f32.vlgmr.msra.gmra.mxu0 %vm149_vm1, %v1476_v8 }
  0x28   :  { %1051 = vmatmul.msk.f32.vlgmr.msra.gmra.mxu1 %vm149_vm1, %v141_v9  ;;  %1085 = vmatpush.msra.mxu2 %v183_v7 }
  0x29   :  { %1052 = vmatmul.msk.f32.vlgmr.msra.gmra.mxu2 %vm149_vm1, %v142_v10 }
  0x2a   :  { %1053 = vmatpush.msk.msrb.mxu2 %vm156_vm0, %v222_v16 }
  0x2c   :  { %245 = vmatpush.msrb.mxu2 %v221_v17 }
  0x2e   :  { %246 = vmatpush.msrb.mxu2 %v220_v18 }
  0x2f   :  { %1049 = vmatmul.msk.f32.gmra.mxu0 %vm149_vm1, %v1482_v11 }
  0x30   :  { %247 = vmatpush.msrb.mxu2 %v219_v19 }
  0x31   :  { %1054 = vmatmul.msk.f32.vlgmr.msrb.gmra.mxu2 %vm149_vm1, %v143_v20 }
  0x39   :  { %1055 = vmatmul.msk.f32.gmra.mxu2 %vm149_vm1, %v144_v21 }
  0xa4   :  { %v177_v12 = vpop.f32.mrf.mxu0 }
  0xa5   :  { %v213_v13 = vpop.f32.mrf.mxu1  ;;  %564 = vrot.lane.b32.xlu2 %v177_v12, %s1378_s6 }
  0xa6   :  { %566 = vrot.lane.b32.xlu1 %v213_v13, %s1378_s6  ;;  %406 = vrot.lane.b32.xlu0 %v213_v13, %s1379_s16 }
  0xa7   :  { %1056 = vmatpush.xpose.msk.msra.mxu3 %vm255_vm2, %v213_v13 }
  0xaa   :  { %1057 = vmatmul.msk.f32.vlgmr.msra.gmra.mxu3 %vm255_vm2, %v177_v12 }
  0xac   :  { %v180_v14 = vpop.f32.mrf.mxu0  ;;  %v216_v15 = vpop.f32.mrf.mxu2 }
  0xad   :  { %1058 = vmatpush.xpose.msk.msrb.mxu3 %vm255_vm2, %v216_v15  ;;  %432 = vrot.lane.b32.xlu2 %v180_v14, %s1379_s16 }
  0xae   :  { %434 = vrot.lane.b32.xlu1 %v216_v15, %s1379_s16  ;;  %404 = vrot.lane.b32.xlu0 %v177_v12, %s1379_s16 }
  0xb2   :  { %1059 = vmatmul.msk.f32.vlgmr.msrb.gmra.mxu3 %vm255_vm2, %v180_v14 }
  0xb4   :  { %v1519_v40 = vpop.f32.mrf.mxu2 }
  0xb5   :  { %592 = vrot.lane.b32.xlu2 %v180_v14, %s1378_s6  ;;  %376 = vmatpush.msra.mxu3 %v1519_v40 }
  0xb6   :  { %724 = vrot.lane.b32.xlu1 %v213_v13, %s1380_s17  ;;  %594 = vrot.lane.b32.xlu0 %v216_v15, %s1378_s6 }
  0xbc   :  { %v1522_v41 = vpop.f32.mrf.mxu2 }
  0xbd   :  { %750 = vrot.lane.b32.xlu2 %v180_v14, %s1380_s17  ;;  %399 = vmatpush.msrb.mxu0 %v1522_v41 }
  0xbe   :  { %752 = vrot.lane.b32.xlu1 %v216_v15, %s1380_s17  ;;  %722 = vrot.lane.b32.xlu0 %v177_v12, %s1380_s17 }
  0xff   :  { %v565_v22 = vpop.permute.xlu2 %564 }
 0x107   :  { %v433_v25 = vpop.permute.xlu2 %432 }
 0x10f   :  { %v593_v30 = vpop.permute.xlu2 %592 }
 0x117   :  { %v751_v36 = vpop.permute.xlu2 %750 }
 0x118   :  { %v567_v23 = vpop.permute.xlu1 %566  ;;  %v407_v24 = vpop.permute.xlu0 %406 }
 0x119   :  { %1062 = vmatpush.xpose.msk.msrb.mxu1 %vm255_vm2, %v407_v24 }
 0x11d   :  { %1068 = vmatpush.xpose.msk.msra.mxu1 %vm255_vm2, %v567_v23 }
 0x120   :  { %v435_v26 = vpop.permute.xlu1 %434  ;;  %v405_v27 = vpop.permute.xlu0 %404 }
 0x121   :  { %1064 = vmatpush.xpose.msk.msra.mxu2 %vm255_vm2, %v435_v26  ;;  %1063 = vmatmul.msk.f32.vlgmr.msrb.gmra.mxu1 %vm255_vm2, %v405_v27 }
 0x124   :  { %1065 = vmatmul.msk.f32.vlgmr.msra.gmra.mxu2 %vm255_vm2, %v433_v25 }
 0x128   :  { %v725_v28 = vpop.permute.xlu1 %724  ;;  %v595_v29 = vpop.permute.xlu0 %594 }
 0x129   :  { %1074 = vmatpush.xpose.msk.msrb.mxu1 %vm255_vm2, %v725_v28  ;;  %1070 = vmatpush.xpose.msk.msrb.mxu2 %vm255_vm2, %v595_v29 }
 0x12a   :  { %1069 = vmatmul.msk.f32.vlgmr.msra.gmra.mxu1 %vm255_vm2, %v565_v22 }
 0x12c   :  { %1071 = vmatmul.msk.f32.vlgmr.msrb.gmra.mxu2 %vm255_vm2, %v593_v30 }
 0x12d   :  { %v279_v31 = vpop.f32.mrf.mxu3 }
 0x12e   :  { %v308_v32 = vmul.f32 0.37796447, %v279_v31 }
 0x130   :  { %v753_v33 = vpop.permute.xlu1 %752  ;;  %v310_v34 = vsel %vm255_vm2, %v308_v32, -inf  ;;  %v723_v35 = vpop.permute.xlu0 %722 }
 0x131   :  { %311 = vmax.xlane.f32.xlu0 %v310_v34  ;;  %1076 = vmatpush.xpose.msk.msra.mxu2 %vm255_vm2, %v753_v33 }
 0x132   :  { %1075 = vmatmul.msk.f32.vlgmr.msrb.gmra.mxu1 %vm255_vm2, %v723_v35 }
 0x134   :  { %1077 = vmatmul.msk.f32.vlgmr.msra.gmra.mxu2 %vm255_vm2, %v751_v36 }
 0x135   :  { %v305_v37 = vpop.f32.mrf.mxu3 }
 0x136   :  { %v309_v38 = vmul.f32 0.37796447, %v305_v37 }
 0x138   :  { %v313_v39 = vsel %vm255_vm2, %v309_v38, -inf }
 0x139   :  { %314 = vmax.xlane.f32.xlu2 %v313_v39 }
 0x19e   :  { %v429_v42 = vpop.f32.mrf.mxu1 }
 0x19f   :  { %v460_v43 = vmul.f32 0.37796447, %v429_v42 }
 0x1a1   :  { %v462_v44 = vsel %vm255_vm2, %v460_v43, -inf }
 0x1a2   :  { %463 = vmax.xlane.f32.xlu1 %v462_v44 }
 0x1a4   :  { %v312_v1 = vpop.xlane.xlu0 %311 }
 0x1a5   :  { %v316_v2 = vsub.f32 %v308_v32, %v312_v1 }
 0x1a7   :  { %v589_v45 = vpop.f32.mrf.mxu1  ;;  %v457_v46 = vpop.f32.mrf.mxu2  ;;  %v318_v3 = vmul.f32 1.442695, %v316_v2 }
 0x1a8   :  { %v620_v47 = vmul.f32 0.37796447, %v589_v45  ;;  %v461_v48 = vmul.f32 0.37796447, %v457_v46 }
 0x1aa   :  { %v622_v49 = vsel %vm255_vm2, %v620_v47, -inf  ;;  %v465_v50 = vsel %vm255_vm2, %v461_v48, -inf }
 0x1ab   :  { %623 = vmax.xlane.f32.xlu2 %v622_v49  ;;  %466 = vmax.xlane.f32.xlu0 %v465_v50 }
 0x1ac   :  { %v315_v51 = vpop.xlane.xlu2 %314 }
 0x1ad   :  { %v317_v52 = vsub.f32 %v309_v38, %v315_v51 }
 0x1af   :  { %v320_v53 = vmul.f32 1.442695, %v317_v52  ;;  %v747_v54 = vpop.f32.mrf.mxu1  ;;  %v617_v56 = vpop.f32.mrf.mxu2 }
 0x1b0   :  { %v778_v55 = vmul.f32 0.37796447, %v747_v54  ;;  %v621_v57 = vmul.f32 0.37796447, %v617_v56 }
 0x1b1   :  { %1103 = vpow2.f32 %v320_v53 }
 0x1b2   :  { %v780_v58 = vsel %vm255_vm2, %v778_v55, -inf  ;;  %v625_v59 = vsel %vm255_vm2, %v621_v57, -inf  ;;  %1105 = vpow2.f32 %v318_v3 }
 0x1b3   :  { %781 = vmax.xlane.f32.xlu1 %v780_v58  ;;  %626 = vmax.xlane.f32.xlu2 %v625_v59 }
 0x1b7   :  { %v1530_v60 = vpop.eup %1103  ;;  %v775_v62 = vpop.f32.mrf.mxu2 }
 0x1b8   :  { %v325_v61 = vsel %vm255_vm2, %v1530_v60, 0.0  ;;  %v779_v63 = vmul.f32 0.37796447, %v775_v62  ;;  %v1539_v4 = vpop.eup %1105 }
 0x1b9   :  { %326 = vadd.xlane.f32.xlu0 %v325_v61  ;;  %v322_v5 = vsel %vm255_vm2, %v1539_v4, 0.0 }
 0x1ba   :  { %v783_v0 = vsel %vm255_vm2, %v779_v63, -inf }
 0x1c1   :  { %784 = vmax.xlane.f32.xlu0 %v783_v0 }
 0x1cc   :  { %511 = vrot.lane.b32.xlu1 %v1519_v40, %s1379_s16 }
 0x1d5   :  { %670 = vrot.lane.b32.xlu0 %v1519_v40, %s1378_s6 }
 0x1f6   :  { %323 = vadd.xlane.f32.xlu1 %v322_v5 }
 0x215   :  { %v464_v6 = vpop.xlane.xlu1 %463 }
 0x216   :  { %v468_v7 = vsub.f32 %v460_v43, %v464_v6 }
 0x218   :  { %v470_v9 = vmul.f32 1.442695, %v468_v7 }
 0x21a   :  { %1107 = vpow2.f32 %v470_v9 }
 0x21e   :  { %v624_v10 = vpop.xlane.xlu2 %623  ;;  %v467_v12 = vpop.xlane.xlu0 %466 }
 0x21f   :  { %v628_v13 = vsub.f32 %v620_v47, %v624_v10  ;;  %v469_v14 = vsub.f32 %v461_v48, %v467_v12 }
 0x220   :  { %v1543_v15 = vpop.eup %1107 }
 0x221   :  { %v630_v16 = vmul.f32 1.442695, %v628_v13  ;;  %v472_v17 = vmul.f32 1.442695, %v469_v14  ;;  %v474_v18 = vsel %vm255_vm2, %v1543_v15, 0.0 }
 0x222   :  { %475 = vadd.xlane.f32.xlu2 %v474_v18 }
 0x223   :  { %1109 = vpow2.f32 %v630_v16 }
 0x224   :  { %1111 = vpow2.f32 %v472_v17 }
 0x226   :  { %v782_v19 = vpop.xlane.xlu1 %781  ;;  %v627_v21 = vpop.xlane.xlu2 %626 }
 0x227   :  { %v786_v20 = vsub.f32 %v778_v55, %v782_v19  ;;  %v629_v22 = vsub.f32 %v621_v57, %v627_v21 }
 0x229   :  { %v1547_v23 = vpop.eup %1109  ;;  %v788_v24 = vmul.f32 1.442695, %v786_v20  ;;  %v632_v26 = vmul.f32 1.442695, %v629_v22 }
 0x22a   :  { %v1549_v25 = vpop.eup %1111  ;;  %v634_v27 = vsel %vm255_vm2, %v1547_v23, 0.0 }
 0x22b   :  { %1113 = vpow2.f32 %v788_v24  ;;  %635 = vadd.xlane.f32.xlu1 %v634_v27  ;;  %v477_v28 = vsel %vm255_vm2, %v1549_v25, 0.0 }
 0x22c   :  { %1115 = vpow2.f32 %v632_v26  ;;  %478 = vadd.xlane.f32.xlu2 %v477_v28  ;;  %v327_v29 = vpop.xlane.xlu0 %326 }
 0x22d   :  { %1117 = vrcp.f32 %v327_v29  ;;  %v354_v39 = vand.u32 2147483648, %v327_v29  ;;  %v352_v44 = vand.u32 2147483647, %v327_v29  ;;  %vm348_vm4 = vweird.f32 %v327_v29 }
 0x22f   :  { %v355_v46 = vor.u32 1.1754944e-38, %v354_v39  ;;  %vm353_vm6 = vcmp.eq.f32.partialorder %v352_v44, 8.507059e+37 }
 0x231   :  { %v1555_v30 = vpop.eup %1113 }
 0x232   :  { %v1557_v31 = vpop.eup %1115  ;;  %v792_v32 = vsel %vm255_vm2, %v1555_v30, 0.0 }
 0x233   :  { %v1118_v33 = vpop.eup %1117  ;;  %793 = vadd.xlane.f32.xlu0 %v792_v32  ;;  %v637_v34 = vsel %vm255_vm2, %v1557_v31, 0.0 }
 0x234   :  { %v344_v35 = vmul.f32 %v1118_v33, %v327_v29  ;;  %v785_v36 = vpop.xlane.xlu0 %784  ;;  %638 = vadd.xlane.f32.xlu2 %v637_v34  ;;  %vm349_vm3 = vweird.f32 %v1118_v33 }
 0x235   :  { %v787_v37 = vsub.f32 %v779_v63, %v785_v36  ;;  %vm350_vm5 = vmor %vm348_vm4, %vm349_vm3 }
 0x236   :  { %v345_v38 = vsub.f32 1.0, %v344_v35 }
 0x237   :  { %v790_v42 = vmul.f32 1.442695, %v787_v37 }
 0x238   :  { %v346_v43 = vmul.f32 %v1118_v33, %v345_v38 }
 0x239   :  { %1119 = vpow2.f32 %v790_v42 }
 0x23a   :  { %v347_v45 = vadd.f32 %v1118_v33, %v346_v43 }
 0x23c   :  { %v351_v47 = vsel %vm350_vm5, %v1118_v33, %v347_v45 }
 0x23d   :  { %v356_v48 = vsel %vm353_vm6, %v355_v46, %v351_v47 }
 0x23e   :  { %v512_v49 = vpop.permute.xlu1 %511  ;;  %v357_v50 = vmul.f32 %v1530_v60, %v356_v48 }
 0x23f   :  { %v1564_v51 = vpop.eup %1119  ;;  %532 = vmatpush.msrb.mxu3 %v512_v49 }
 0x240   :  { %1061 = vmatmul.msk.f32.vlgmr.msrb.gmra.mxu0 %vm255_vm2, %v357_v50  ;;  %884 = vst.msk [vmem:[#allocation15 + $0x20] sm:$0xff] %vm255_vm2, %v357_v50  ;;  %v795_v52 = vsel %vm255_vm2, %v1564_v51, 0.0 }
 0x241   :  { %796 = vadd.xlane.f32.xlu2 %v795_v52 }
 0x244   :  { %828 = vrot.lane.b32.xlu1 %v1519_v40, %s1380_s17 }
 0x247   :  { %696 = vrot.lane.b32.xlu0 %v1522_v41, %s1378_s6  ;;  %v671_v0 = vpop.permute.xlu0 %670 }
 0x24c   :  { %854 = vrot.lane.b32.xlu1 %v1522_v41, %s1380_s17 }
 0x259   :  { %538 = vrot.lane.b32.xlu2 %v1522_v41, %s1379_s16 }
 0x269   :  { %v324_v53 = vpop.xlane.xlu1 %323 }
 0x26a   :  { %1121 = vrcp.f32 %v324_v53  ;;  %v339_v57 = vand.u32 2147483648, %v324_v53  ;;  %v337_v59 = vand.u32 2147483647, %v324_v53  ;;  %vm333_vm8 = vweird.f32 %v324_v53 }
 0x26c   :  { %v340_v40 = vor.u32 1.1754944e-38, %v339_v57  ;;  %vm338_vm10 = vcmp.eq.f32.partialorder %v337_v59, 8.507059e+37 }
 0x270   :  { %v1122_v54 = vpop.eup %1121 }
 0x271   :  { %v329_v55 = vmul.f32 %v1122_v54, %v324_v53  ;;  %vm334_vm7 = vweird.f32 %v1122_v54 }
 0x272   :  { %vm335_vm9 = vmor %vm333_vm8, %vm334_vm7 }
 0x273   :  { %v330_v56 = vsub.f32 1.0, %v329_v55 }
 0x275   :  { %v331_v58 = vmul.f32 %v1122_v54, %v330_v56 }
 0x277   :  { %v332_v60 = vadd.f32 %v1122_v54, %v331_v58 }
 0x279   :  { %v336_v61 = vsel %vm335_vm9, %v1122_v54, %v332_v60 }
 0x27a   :  { %v341_v62 = vsel %vm338_vm10, %v340_v40, %v336_v61 }
 0x27b   :  { %v342_v63 = vmul.f32 %v1539_v4, %v341_v62 }
 0x27d   :  { %1060 = vmatmul.msk.f32.vlgmr.msra.gmra.mxu3 %vm255_vm2, %v342_v63  ;;  %880 = vst.msk [vmem:[#allocation15] sm:$0xff] %vm255_vm2, %v342_v63 }
 0x27e   :  { %691 = vmatpush.msra.mxu3 %v671_v0 }
 0x295   :  { %v476_v41 = vpop.xlane.xlu2 %475 }
 0x296   :  { %1123 = vrcp.f32 %v476_v41  ;;  %v491_v9 = vand.u32 2147483648, %v476_v41  ;;  %v489_v10 = vand.u32 2147483647, %v476_v41  ;;  %vm485_vm12 = vweird.f32 %v476_v41 }
 0x298   :  { %v492_v16 = vor.u32 1.1754944e-38, %v491_v9  ;;  %vm490_vm14 = vcmp.eq.f32.partialorder %v489_v10, 8.507059e+37 }
 0x29c   :  { %v1124_v1 = vpop.eup %1123 }
 0x29d   :  { %v481_v2 = vmul.f32 %v1124_v1, %v476_v41  ;;  %vm486_vm11 = vweird.f32 %v1124_v1 }
 0x29e   :  { %v636_v3 = vpop.xlane.xlu1 %635  ;;  %vm487_vm13 = vmor %vm485_vm12, %vm486_vm11 }
 0x29f   :  { %1125 = vrcp.f32 %v636_v3  ;;  %v479_v5 = vpop.xlane.xlu2 %478  ;;  %v482_v6 = vsub.f32 1.0, %v481_v2  ;;  %v651_v24 = vand.u32 2147483648, %v636_v3  ;;  %v649_v28 = vand.u32 2147483647, %v636_v3 }
 0x2a0   :  { %1127 = vrcp.f32 %v479_v5  ;;  %v506_v29 = vand.u32 2147483648, %v479_v5  ;;  %v504_v33 = vand.u32 2147483647, %v479_v5  ;;  %vm645_vm3 = vweird.f32 %v636_v3 }
 0x2a1   :  { %v483_v7 = vmul.f32 %v1124_v1, %v482_v6  ;;  %v652_v37 = vor.u32 1.1754944e-38, %v651_v24  ;;  %vm500_vm5 = vweird.f32 %v479_v5  ;;  %vm650_vm6 = vcmp.eq.f32.partialorder %v649_v28, 8.507059e+37  ;;  %v922_v28 = vld [vmem:[#allocation13 + $0x10] sm:$0xff] }
 0x2a2   :  { %v507_v42 = vor.u32 1.1754944e-38, %v506_v29  ;;  %vm505_vm8 = vcmp.eq.f32.partialorder %v504_v33, 8.507059e+37  ;;  %v921_v29 = vld [vmem:[#allocation13 + $0x8] sm:$0xff] }
 0x2a3   :  { %v484_v4 = vadd.f32 %v1124_v1, %v483_v7 }
 0x2a5   :  { %v1126_v12 = vpop.eup %1125  ;;  %v488_v14 = vsel %vm487_vm13, %v1124_v1, %v484_v4 }
 0x2a6   :  { %v1128_v13 = vpop.eup %1127  ;;  %v641_v17 = vmul.f32 %v1126_v12, %v636_v3  ;;  %v794_v18 = vpop.xlane.xlu0 %793  ;;  %v493_v21 = vsel %vm490_vm14, %v492_v16, %v488_v14  ;;  %vm646_vm15 = vweird.f32 %v1126_v12 }
 0x2a7   :  { %v496_v19 = vmul.f32 %v1128_v13, %v479_v5  ;;  %1129 = vrcp.f32 %v794_v18  ;;  %v1581_v20 = vpop.xlane.xlu2 %638  ;;  %vm501_vm0 = vweird.f32 %v1128_v13  ;;  %v494_v34 = vmul.f32 %v1543_v15, %v493_v21  ;;  %vm647_vm4 = vmor %vm645_vm3, %vm646_vm15 }
 0x2a8   :  { %v642_v22 = vsub.f32 1.0, %v641_v17  ;;  %1131 = vrcp.f32 %v1581_v20  ;;  %vm502_vm7 = vmor %vm500_vm5, %vm501_vm0  ;;  %v809_v49 = vand.u32 2147483648, %v794_v18  ;;  %v807_v54 = vand.u32 2147483647, %v794_v18 }
 0x2a9   :  { %v497_v26 = vsub.f32 1.0, %v496_v19  ;;  %1066 = vmatmul.msk.f32.vlgmr.msrb.gmra.mxu3 %vm255_vm2, %v494_v34  ;;  %881 = vst.msk [vmem:[#allocation15 + $0x8] sm:$0xff] %vm255_vm2, %v494_v34  ;;  %vm803_vm10 = vweird.f32 %v794_v18  ;;  %v666_v56 = vand.u32 2147483648, %v1581_v20  ;;  %v664_v59 = vand.u32 2147483647, %v1581_v20 }
 0x2aa   :  { %v643_v27 = vmul.f32 %v1126_v12, %v642_v22  ;;  %vm808_vm13 = vcmp.eq.f32.partialorder %v807_v54, 8.507059e+37  ;;  %vm660_vm14 = vweird.f32 %v1581_v20 }
 0x2ab   :  { %v498_v32 = vmul.f32 %v1128_v13, %v497_v26  ;;  %v667_v63 = vor.u32 1.1754944e-38, %v666_v56  ;;  %vm665_vm0 = vcmp.eq.f32.partialorder %v664_v59, 8.507059e+37 }
 0x2ac   :  { %v644_v35 = vadd.f32 %v1126_v12, %v643_v27  ;;  %v923_v27 = vld [vmem:[#allocation13 + $0x18] sm:$0xff] }
 0x2ad   :  { %v1130_v36 = vpop.eup %1129  ;;  %v499_v38 = vadd.f32 %v1128_v13, %v498_v32  ;;  %943 = vmatpush.msra.mxu1 %v923_v27  ;;  %v920_v32 = vld [vmem:[#allocation13] sm:$0xff] }
 0x2ae   :  { %v648_v39 = vsel %vm647_vm4, %v1126_v12, %v644_v35  ;;  %v799_v43 = vmul.f32 %v1130_v36, %v794_v18  ;;  %v1132_v44 = vpop.eup %1131  ;;  %vm804_vm9 = vweird.f32 %v1130_v36 }
 0x2af   :  { %v653_v45 = vsel %vm650_vm6, %v652_v37, %v648_v39  ;;  %v503_v46 = vsel %vm502_vm7, %v1128_v13, %v499_v38  ;;  %v656_v48 = vmul.f32 %v1132_v44, %v1581_v20  ;;  %vm661_vm11 = vweird.f32 %v1132_v44  ;;  %vm805_vm12 = vmor %vm803_vm10, %vm804_vm9  ;;  %944 = vmatpush.msra.mxu1 %v922_v28 }
 0x2b0   :  { %v508_v15 = vsel %vm505_vm8, %v507_v42, %v503_v46  ;;  %v800_v47 = vsub.f32 1.0, %v799_v43  ;;  %v654_v50 = vmul.f32 %v1547_v23, %v653_v45  ;;  %v810_v23 = vor.u32 1.1754944e-38, %v809_v49  ;;  %vm662_vm15 = vmor %vm660_vm14, %vm661_vm11 }
 0x2b1   :  { %v509_v52 = vmul.f32 %v1549_v25, %v508_v15  ;;  %v657_v55 = vsub.f32 1.0, %v656_v48  ;;  %945 = vmatpush.msra.mxu1 %v921_v29  ;;  %vm914_vm7 = vcmask 130048   ;;  %vm917_vm8 = vcmask 195584  }
 0x2b2   :  { %v801_v53 = vmul.f32 %v1130_v36, %v800_v47  ;;  %882 = vst.msk [vmem:[#allocation15 + $0x10] sm:$0xff] %vm255_vm2, %v654_v50  ;;  %1072 = vmatmul.msk.f32.vlgmr.msra.gmra.mxu3 %vm255_vm2, %v654_v50  ;;  %vm924_vm9 = vcmask 261120  }
 0x2b3   :  { %v658_v58 = vmul.f32 %v1132_v44, %v657_v55  ;;  %885 = vst.msk [vmem:[#allocation15 + $0x28] sm:$0xff] %vm255_vm2, %v509_v52  ;;  %946 = vmatpush.msra.mxu1 %v920_v32 }
 0x2b4   :  { %v802_v57 = vadd.f32 %v1130_v36, %v801_v53  ;;  %v797_v60 = vpop.xlane.xlu2 %796  ;;  %v1383_v53 = vmov 28.0  }
 0x2b5   :  { %1133 = vrcp.f32 %v797_v60  ;;  %v659_v40 = vadd.f32 %v1132_v44, %v658_v58  ;;  %v824_v4 = vand.u32 2147483648, %v797_v60  ;;  %v822_v12 = vand.u32 2147483647, %v797_v60 }
 0x2b6   :  { %v806_v25 = vsel %vm805_vm12, %v1130_v36, %v802_v57  ;;  %v829_v61 = vpop.permute.xlu1 %828  ;;  %vm818_vm4 = vweird.f32 %v797_v60  ;;  %1135 = vrcp.f32 %v1383_v53 }
 0x2b7   :  { %v811_v62 = vsel %vm808_vm13, %v810_v23, %v806_v25  ;;  %849 = vmatpush.msrb.mxu3 %v829_v61  ;;  %v663_v0 = vsel %vm662_vm15, %v1132_v44, %v659_v40  ;;  %v825_v13 = vor.u32 1.1754944e-38, %v824_v4  ;;  %vm823_vm6 = vcmp.eq.f32.partialorder %v822_v12, 8.507059e+37 }
 0x2b8   :  { %v812_v41 = vmul.f32 %v1555_v30, %v811_v62  ;;  %v668_v1 = vsel %vm665_vm0, %v667_v63, %v663_v0 }
 0x2b9   :  { %v669_v2 = vmul.f32 %v1557_v31, %v668_v1  ;;  %v697_v9 = vpop.permute.xlu0 %696 }
 0x2ba   :  { %883 = vst.msk [vmem:[#allocation15 + $0x18] sm:$0xff] %vm255_vm2, %v812_v41  ;;  %1078 = vmatmul.msk.f32.vlgmr.msrb.gmra.mxu3 %vm255_vm2, %v812_v41 }
 0x2bb   :  { %v1134_v3 = vpop.eup %1133  ;;  %886 = vst.msk [vmem:[#allocation15 + $0x30] sm:$0xff] %vm255_vm2, %v669_v2 }
 0x2bc   :  { %v814_v5 = vmul.f32 %v1134_v3, %v797_v60  ;;  %v539_v6 = vpop.permute.xlu2 %538  ;;  %vm819_vm3 = vweird.f32 %v1134_v3  ;;  %v1136_v54 = vpop.eup %1135 }
 0x2bd   :  { %559 = vmatpush.msra.mxu0 %v539_v6  ;;  %vm820_vm5 = vmor %vm818_vm4, %vm819_vm3  ;;  %v401_v20 = vpop.f32.mrf.mxu0  ;;  %v961_v55 = vmul.f32 28.0, %v1136_v54 }
 0x2be   :  { %v815_v7 = vsub.f32 1.0, %v814_v5  ;;  %v855_v10 = vpop.permute.xlu1 %854  ;;  %1067 = vmatmul.msk.f32.vlgmr.msra.gmra.mxu0 %vm255_vm2, %v509_v52 }
 0x2bf   :  { %717 = vmatpush.msrb.mxu0 %v697_v9  ;;  %v962_v56 = vsub.f32 1.0, %v961_v55 }
 0x2c0   :  { %v816_v30 = vmul.f32 %v1134_v3, %v815_v7 }
 0x2c1   :  { %875 = vmatpush.msra.mxu0 %v855_v10  ;;  %v963_v57 = vmul.f32 %v1136_v54, %v962_v56 }
 0x2c2   :  { %v817_v31 = vadd.f32 %v1134_v3, %v816_v30 }
 0x2c3   :  { %v964_v58 = vadd.f32 %v1136_v54, %v963_v57 }
 0x2c4   :  { %v821_v14 = vsel %vm820_vm5, %v1134_v3, %v817_v31 }
 0x2c5   :  { %v826_v16 = vsel %vm823_vm6, %v825_v13, %v821_v14 }
 0x2c6   :  { %1073 = vmatmul.msk.f32.vlgmr.msrb.gmra.mxu0 %vm255_vm2, %v669_v2  ;;  %v827_v17 = vmul.f32 %v1564_v51, %v826_v16 }
 0x2c8   :  { %887 = vst.msk [vmem:[#allocation15 + $0x38] sm:$0xff] %vm255_vm2, %v827_v17 }
 0x2c9   :  { %1032 = dma.vmem_to_hbm [thread:$0]  %s1025_s19, 1024, %s1027_s22, [#allocation16], %s1370_s13, %s1370_s13, %s1371_s14  }
 0x2ce   :  { %1079 = vmatmul.msk.f32.vlgmr.msra.gmra.mxu0 %vm255_vm2, %v827_v17 }
 0x300   :  { %v378_v18 = vpop.f32.mrf.mxu3 }
 0x32c   :  { %v534_v19 = vpop.f32.mrf.mxu3 }
 0x32d   :  { %890 = vrot.lane.b32.xlu0 %v534_v19, %s1371_s14 }
 0x335   :  { %v693_v21 = vpop.f32.mrf.mxu3 }
 0x336   :  { %898 = vrot.lane.b32.xlu1 %v693_v21, %s1381_s18 }
 0x33b   :  { %v561_v22 = vpop.f32.mrf.mxu0 }
 0x33c   :  { %892 = vrot.lane.b32.xlu2 %v561_v22, %s1371_s14 }
 0x33d   :  { %v851_v24 = vpop.f32.mrf.mxu3 }
 0x33e   :  { %906 = vrot.lane.b32.xlu0 %v851_v24, %s1382_s1 }
 0x343   :  { %v719_v26 = vpop.f32.mrf.mxu0 }
 0x344   :  { %900 = vrot.lane.b32.xlu1 %v719_v26, %s1381_s18 }
 0x34b   :  { %v877_v51 = vpop.f32.mrf.mxu0 }
 0x34c   :  { %908 = vrot.lane.b32.xlu0 %v877_v51, %s1382_s1 }
 0x396   :  { %v893_v39 = vpop.permute.xlu2 %892 }
 0x397   :  { %v913_v43 = vsel %vm255_vm2, %v401_v20, %v893_v39 }
 0x39f   :  { %v891_v33 = vpop.permute.xlu0 %890 }
 0x3a0   :  { %v912_v35 = vsel %vm255_vm2, %v378_v18, %v891_v33  ;;  %vm965_vm2 = vweird.f32 %v1136_v54 }
 0x3a1   :  { %v966_v59 = vsel %vm965_vm2, %v1136_v54, %v964_v58 }
 0x3a8   :  { %v899_v34 = vpop.permute.xlu1 %898 }
 0x3a9   :  { %v915_v36 = vsel %vm914_vm7, %v912_v35, %v899_v34 }
 0x3b0   :  { %v907_v37 = vpop.permute.xlu0 %906 }
 0x3b1   :  { %v918_v38 = vsel %vm917_vm8, %v915_v36, %v907_v37 }
 0x3b2   :  { %1080 = vmatmul.msk.f32.vlgmr.msra.gmra.mxu1 %vm924_vm9, %v918_v38 }
 0x3b6   :  { %v901_v42 = vpop.permute.xlu1 %900 }
 0x3b7   :  { %v916_v44 = vsel %vm914_vm7, %v913_v43, %v901_v42 }
 0x3be   :  { %v909_v45 = vpop.permute.xlu0 %908 }
 0x3bf   :  { %v919_v46 = vsel %vm917_vm8, %v916_v44, %v909_v45 }
 0x3c0   :  { %1081 = vmatmul.msk.f32.gmra.mxu1 %vm924_vm9, %v919_v46 }
 0x42f   :  { %v948_v15 = vpop.f32.mrf.mxu1 }
 0x430   :  { %v949_v47 = vadd.f32 %v948_v15, %v1476_v8 }
 0x432   :  { %v954_v48 = vsel %vm149_vm1, %v949_v47, 0.0 }
 0x433   :  { %955 = vadd.xlane.f32.xlu2 %v954_v48 }
 0x43d   :  { %v951_v49 = vpop.f32.mrf.mxu1 }
 0x43e   :  { %v952_v50 = vadd.f32 %v951_v49, %v1482_v11 }
 0x440   :  { %v957_v52 = vsel %vm149_vm1, %v952_v50, 0.0 }
 0x441   :  { %958 = vadd.xlane.f32.xlu1 %v957_v52 }
 0x4a6   :  { %v956_v60 = vpop.xlane.xlu2 %955 }
 0x4a7   :  { %v967_v8 = vmul.f32 %v966_v59, %v956_v60 }
 0x4a9   :  { %v969_v23 = vsub.f32 %v949_v47, %v967_v8 }
 0x4ab   :  { %v971_v25 = vmul.f32 %v969_v23, %v969_v23 }
 0x4ad   :  { %v973_v40 = vsel %vm149_vm1, %v971_v25, 0.0 }
 0x4ae   :  { %974 = vadd.xlane.f32.xlu0 %v973_v40 }
 0x4b4   :  { %v959_v11 = vpop.xlane.xlu1 %958 }
 0x4b5   :  { %v968_v61 = vmul.f32 %v966_v59, %v959_v11 }
 0x4b7   :  { %v970_v62 = vsub.f32 %v952_v50, %v968_v61 }
 0x4b9   :  { %v972_v63 = vmul.f32 %v970_v62, %v970_v62 }
 0x4bb   :  { %v976_v0 = vsel %vm149_vm1, %v972_v63, 0.0 }
 0x4bc   :  { %977 = vadd.xlane.f32.xlu2 %v976_v0 }
 0x521   :  { %v975_v41 = vpop.xlane.xlu0 %974 }
 0x522   :  { %v979_v1 = vmul.f32 %v975_v41, %v966_v59 }
 0x524   :  { %v981_v2 = vadd.f32 1e-05, %v979_v1 }
 0x526   :  { %1137 = vrsqrt.f32 %v981_v2  ;;  %vm989_vm11 = vweird.f32 %v981_v2 }
 0x52c   :  { %v1138_v3 = vpop.eup %1137 }
 0x52d   :  { %v984_v6 = vmul.f32 %v1138_v3, %v981_v2  ;;  %vm990_vm10 = vweird.f32 %v1138_v3 }
 0x52e   :  { %vm991_vm12 = vmor %vm989_vm11, %vm990_vm10 }
 0x52f   :  { %v978_v5 = vpop.xlane.xlu2 %977  ;;  %v985_v9 = vmul.f32 %v1138_v3, %v984_v6 }
 0x530   :  { %v980_v7 = vmul.f32 %v978_v5, %v966_v59 }
 0x531   :  { %v986_v4 = vmul.f32 0.5, %v985_v9 }
 0x532   :  { %v982_v10 = vadd.f32 1e-05, %v980_v7 }
 0x533   :  { %v987_v30 = vsub.f32 1.5, %v986_v4 }
 0x534   :  { %1139 = vrsqrt.f32 %v982_v10  ;;  %vm999_vm14 = vweird.f32 %v982_v10 }
 0x535   :  { %v988_v12 = vmul.f32 %v1138_v3, %v987_v30 }
 0x537   :  { %v992_v13 = vsel %vm991_vm12, %v1138_v3, %v988_v12 }
 0x538   :  { %v1003_v14 = vmul.f32 %v992_v13, %v969_v23 }
 0x53a   :  { %v1140_v31 = vpop.eup %1139  ;;  %1005 = vst.msk [vmem:[#allocation14] sm:$0xff] %vm149_vm1, %v1003_v14 }
 0x53b   :  { %v994_v16 = vmul.f32 %v1140_v31, %v982_v10  ;;  %vm1000_vm13 = vweird.f32 %v1140_v31 }
 0x53c   :  { %vm1001_vm15 = vmor %vm999_vm14, %vm1000_vm13 }
 0x53d   :  { %v995_v17 = vmul.f32 %v1140_v31, %v994_v16 }
 0x53f   :  { %v996_v18 = vmul.f32 0.5, %v995_v17 }
 0x541   :  { %v997_v19 = vsub.f32 1.5, %v996_v18 }
 0x543   :  { %v998_v20 = vmul.f32 %v1140_v31, %v997_v19 }
 0x545   :  { %v1002_v21 = vsel %vm1001_vm15, %v1140_v31, %v998_v20 }
 0x546   :  { %v1004_v22 = vmul.f32 %v1002_v21, %v970_v62 }
 0x548   :  { %1006 = vst.msk [vmem:[#allocation14 + $0x8] sm:$0xff] %vm149_vm1, %v1004_v22 }
 0x549   :  { %1019 = dma.vmem_to_hbm [thread:$0]  %s1012_s23, 256, %s1014_s25, [#allocation4], %s1370_s13, %s1370_s13, %s1371_s14  }
 0x54a   :  { %1365 = dma.done.wait [#allocation4], 256  }
 0x54b   :  { %1366 = vsyncadd [#allocation4], 4294967040 }
 0x54c   :  { %1367 = dma.done.wait [#allocation16], 1024  }
 0x54d   :  { %1368 = vsyncadd [#allocation16], 4294966272 }
 0x54e   :  { %1041 = vsyncpa [#allocation3], 1 }
 0x54f   :  { %1042 = vsyncpa [#allocation6], 1 }
 0x550   :  { %1043 = vsyncpa [#allocation9], 1 }
 0x551   :  { %1044 = vsyncpa [#allocation12], 1 }
 0x552   :  { %1045 = vsyncpa [#allocation4], 1 }
 0x553   :  { %1046 = vsyncpa [#allocation16], 1 }

</bundles_post_ra>
